<compile_context>
chip_gen: v7x
topology: tpu7x:2x2x1
jax: 0.10.0
libtpu: 0.0.40
codegen_flags: <defaults>
</compile_context>

<pallas_src>
import jax
import jax.numpy as jnp
from jax import lax
from jax.experimental import pallas as pl
from jax.experimental.pallas import tpu as pltpu


def mlp_kernel(x_ref, w1_ref, b1_ref, w2_ref, b2_ref, w3_ref, b3_ref, o_ref):
    """One batch tile of the 3-layer MLP; batch lives on the lane axis.

    x_ref  : [Bt, in_dim]   row-major batch tile (no host transpose)
    w1_ref : [64, in_dim]   b1_ref : [64, 1]
    w2_ref : [32, 64]       b2_ref : [32, 1]
    w3_ref : [32, 1]        b3_ref : (1,) scalar, SMEM
    o_ref  : [1, Bt]        lane-dense output slab
    """
    # Layer 1 + ReLU: contract x's last (feature) dim ->  [64, Bt]  (MXU, f32 acc)
    h1 = lax.dot_general(
        w1_ref[...], x_ref[...],
        dimension_numbers=(((1,), (1,)), ((), ())),
        preferred_element_type=jnp.float32,
    ) + b1_ref[...]
    h1 = jnp.maximum(h1, 0.0)

    # Layer 2 + ReLU: [32, 64] @ [64, Bt] -> [32, Bt]
    h2 = jnp.dot(w2_ref[...], h1, preferred_element_type=jnp.float32) + b2_ref[...]
    h2 = jnp.maximum(h2, 0.0)

    # Layer 3 (out_features == 1): VPU broadcast-mul + cross-sublane reduce
    # instead of an N=1 MXU matmul.
    o = jnp.sum(h2 * w3_ref[...], axis=0, keepdims=True) + b3_ref[0]
    o_ref[...] = o.astype(o_ref.dtype)


def _choose_tiling(B):
    """Return (batch_tile, padded_B).

    Small batches: one grid step, full-array block (always layout-legal).
    Large batches: big lane-dense tiles (multiple of 512, up to 16384) so the
    fixed per-grid-step cost is amortized; B is padded up to a tile multiple
    so we never fall back to a whole-batch tile that could blow v7x VMEM.
    """
    if B <= 4096:
        return B, B
    tile = 16384
    while tile > 512 and B < 2 * tile:
        tile //= 2
    padded = ((B + tile - 1) // tile) * tile
    return tile, padded


def neural_network_model(x, params, *, batch_tile=None):
    """x: [B, input_size] float32 -> [B, 1] float32 (matches PyTorch forward)."""
    w1, b1, w2, b2, w3, b3 = params           # w*: [in, out], b*: [out]
    B, in_dim = x.shape
    h1_dim, h2_dim = w1.shape[1], w2.shape[1]

    if batch_tile is None:
        batch_tile, padded_B = _choose_tiling(B)
    else:
        padded_B = ((B + batch_tile - 1) // batch_tile) * batch_tile
    grid = (padded_B // batch_tile,)

    # Zero-pad independent batch rows if needed (sliced back after the call).
    if padded_B != B:
        x_in = jnp.pad(x, ((0, padded_B - B), (0, 0)))
    else:
        x_in = x

    # Kernel-side weight layout: features on sublanes.
    w1t = w1.T                                # [64, in_dim]
    w2t = w2.T                                # [32, 64]
    b1c = b1.reshape(h1_dim, 1)
    b2c = b2.reshape(h2_dim, 1)
    w3c = w3.reshape(h2_dim, 1)
    b3s = b3.reshape(1)                       # scalar -> SMEM

    flops = int(2 * padded_B * (in_dim * h1_dim + h1_dim * h2_dim + h2_dim))
    bytes_accessed = int(4 * (padded_B * in_dim + w1.size + b1.size + w2.size
                              + b2.size + w3.size + b3.size + padded_B))

    # VMEM budget: double-buffered x / out blocks + h1/h2 staging + weights.
    vmem_needed = 4 * (2 * batch_tile * in_dim
                       + 2 * batch_tile
                       + (h1_dim + h2_dim) * batch_tile
                       + w1.size + w2.size + w3.size + h1_dim + h2_dim)
    vmem_limit = int(min(max(2 * vmem_needed, 16 << 20), 64 << 20))

    full = lambda shape: pl.BlockSpec(shape, lambda i: (0, 0))

    out_t = pl.pallas_call(
        mlp_kernel,
        out_shape=jax.ShapeDtypeStruct((1, padded_B), jnp.float32),
        grid_spec=pl.GridSpec(
            grid=grid,
            in_specs=[
                pl.BlockSpec((batch_tile, in_dim), lambda i: (i, 0)),  # x tile
                full(w1t.shape), full(b1c.shape),                      # layer 1
                full(w2t.shape), full(b2c.shape),                      # layer 2
                full(w3c.shape),                                       # layer 3 weight
                pl.BlockSpec(memory_space=pltpu.MemorySpace.SMEM),     # layer 3 bias
            ],
            out_specs=pl.BlockSpec((1, batch_tile), lambda i: (0, i)),
        ),
        compiler_params=pltpu.CompilerParams(
            dimension_semantics=("parallel",),
            vmem_limit_bytes=vmem_limit,
        ),
        cost_estimate=pl.CostEstimate(
            flops=flops, transcendentals=0, bytes_accessed=bytes_accessed),
    )(x_in, w1t, b1c, w2t, b2c, w3c, b3s)

    # [1, padded_B] -> [B, 1]; contiguous reshape + cheap row slice.
    return out_t.reshape(padded_B, 1)[:B]


def init_params(key, input_size):
    """Deterministic init matching the nn.Sequential shapes in __init__."""
    k1, k2, k3 = jax.random.split(key, 3)

    def linear(k, fan_in, fan_out):
        # Kaiming-uniform-ish bound like torch.nn.Linear default
        bound = 1.0 / jnp.sqrt(fan_in)
        kw, kb = jax.random.split(k)
        w = jax.random.uniform(kw, (fan_in, fan_out), jnp.float32, -bound, bound)
        b = jax.random.uniform(kb, (fan_out,), jnp.float32, -bound, bound)
        return w, b

    w1, b1 = linear(k1, input_size, 64)
    w2, b2 = linear(k2, 64, 32)
    w3, b3 = linear(k3, 32, 1)
    return (w1, b1, w2, b2, w3, b3)


def reference(x, params):
    w1, b1, w2, b2, w3, b3 = params
    h1 = jnp.maximum(x @ w1 + b1, 0.0)
    h2 = jnp.maximum(h1 @ w2 + b2, 0.0)
    return h2 @ w3 + b3


if __name__ == "__main__":
    input_size = 16
    batch = 32

    key = jax.random.PRNGKey(0)
    kx, kp = jax.random.split(key)
    x = jax.random.normal(kx, (batch, input_size), dtype=jnp.float32)
    params = init_params(kp, input_size)

    out = neural_network_model(x, params)     # B=32 -> single grid step
    out = jax.block_until_ready(out)

    ref = reference(x, params)
    assert out.shape == (batch, 1)
    assert jnp.allclose(out, ref, atol=1e-5, rtol=1e-5), "mismatch vs reference"

    print("KERNEL_OK")
</pallas_src>

<mosaic_0001>
module attributes {stable_mosaic.version = 11 : i64} {
  func.func @mlp_kernel(%arg0: i32, %arg1: memref<32x16xf32, #tpu.memory_space<vmem>>, %arg2: memref<64x16xf32, #tpu.memory_space<vmem>>, %arg3: memref<64x1xf32, #tpu.memory_space<vmem>>, %arg4: memref<32x64xf32, #tpu.memory_space<vmem>>, %arg5: memref<32x1xf32, #tpu.memory_space<vmem>>, %arg6: memref<32x1xf32, #tpu.memory_space<vmem>>, %arg7: memref<1xf32, #tpu.memory_space<smem>>, %arg8: memref<1x32xf32, #tpu.memory_space<vmem>>) attributes {dimension_semantics = [#tpu.dimension_semantics<parallel>], iteration_bounds = array<i64: 1>, scalar_prefetch = 0 : i64, scratch_operands = 0 : i64, tpu.core_type = #tpu.core_type<tc>, window_params = [{transform_indices = @transform_0, window_bounds = array<i64: 32, 16>}, {pipeline_mode = #tpu.pipeline_mode<synchronous>, transform_indices = @transform_1, window_bounds = array<i64: 64, 16>}, {pipeline_mode = #tpu.pipeline_mode<synchronous>, transform_indices = @transform_2, window_bounds = array<i64: 64, 1>}, {pipeline_mode = #tpu.pipeline_mode<synchronous>, transform_indices = @transform_3, window_bounds = array<i64: 32, 64>}, {pipeline_mode = #tpu.pipeline_mode<synchronous>, transform_indices = @transform_4, window_bounds = array<i64: 32, 1>}, {pipeline_mode = #tpu.pipeline_mode<synchronous>, transform_indices = @transform_5, window_bounds = array<i64: 32, 1>}, {transform_indices = @transform_6, window_bounds = array<i64: 1>}, {transform_indices = @transform_7, window_bounds = array<i64: 1, 32>}]} {
    %c0 = arith.constant 0 : index
    %c0_0 = arith.constant 0 : index
    %0 = vector.load %arg2[%c0, %c0_0] : memref<64x16xf32, #tpu.memory_space<vmem>>, vector<64x16xf32>
    %c0_1 = arith.constant 0 : index
    %c0_2 = arith.constant 0 : index
    %1 = vector.load %arg1[%c0_1, %c0_2] : memref<32x16xf32, #tpu.memory_space<vmem>>, vector<32x16xf32>
    %cst = arith.constant dense<0.000000e+00> : vector<64x32xf32>
    %2 = tpu.matmul %0, %1, %cst {dimension_numbers = #tpu.dot_dimension_numbers<[1], [1], [0], [0], [0, 0, 1, 0], [], []>} : vector<64x16xf32>, vector<32x16xf32>, vector<64x32xf32> -> vector<64x32xf32>
    %c0_3 = arith.constant 0 : index
    %c0_4 = arith.constant 0 : index
    %3 = vector.load %arg3[%c0_3, %c0_4] : memref<64x1xf32, #tpu.memory_space<vmem>>, vector<64x1xf32>
    %4 = vector.broadcast %3 : vector<64x1xf32> to vector<64x32xf32>
    %5 = arith.addf %2, %4 : vector<64x32xf32>
    %cst_5 = arith.constant 0.000000e+00 : f32
    %6 = vector.broadcast %cst_5 : f32 to vector<64x32xf32>
    %7 = arith.maximumf %5, %6 : vector<64x32xf32>
    %c0_6 = arith.constant 0 : index
    %c0_7 = arith.constant 0 : index
    %8 = vector.load %arg4[%c0_6, %c0_7] : memref<32x64xf32, #tpu.memory_space<vmem>>, vector<32x64xf32>
    %cst_8 = arith.constant dense<0.000000e+00> : vector<32x32xf32>
    %9 = tpu.matmul %8, %7, %cst_8 {dimension_numbers = #tpu.dot_dimension_numbers<[1], [0], [0], [1], [0, 0, 1, 1], [], []>} : vector<32x64xf32>, vector<64x32xf32>, vector<32x32xf32> -> vector<32x32xf32>
    %c0_9 = arith.constant 0 : index
    %c0_10 = arith.constant 0 : index
    %10 = vector.load %arg5[%c0_9, %c0_10] : memref<32x1xf32, #tpu.memory_space<vmem>>, vector<32x1xf32>
    %11 = vector.broadcast %10 : vector<32x1xf32> to vector<32x32xf32>
    %12 = arith.addf %9, %11 : vector<32x32xf32>
    %cst_11 = arith.constant 0.000000e+00 : f32
    %13 = vector.broadcast %cst_11 : f32 to vector<32x32xf32>
    %14 = arith.maximumf %12, %13 : vector<32x32xf32>
    %c0_12 = arith.constant 0 : index
    %c0_13 = arith.constant 0 : index
    %15 = vector.load %arg6[%c0_12, %c0_13] : memref<32x1xf32, #tpu.memory_space<vmem>>, vector<32x1xf32>
    %16 = vector.broadcast %15 : vector<32x1xf32> to vector<32x32xf32>
    %17 = arith.mulf %14, %16 : vector<32x32xf32>
    %cst_14 = arith.constant dense<0.000000e+00> : vector<32xf32>
    %18 = vector.multi_reduction <add>, %17, %cst_14 [0] : vector<32x32xf32> to vector<32xf32>
    %19 = vector.shape_cast %18 : vector<32xf32> to vector<1x32xf32>
    %c0_15 = arith.constant 0 : index
    %20 = memref.load %arg7[%c0_15] : memref<1xf32, #tpu.memory_space<smem>>
    %21 = vector.broadcast %20 : f32 to vector<1x32xf32>
    %22 = arith.addf %19, %21 : vector<1x32xf32>
    %c0_16 = arith.constant 0 : index
    %c0_17 = arith.constant 0 : index
    %23 = vector.load %arg8[%c0_16, %c0_17] : memref<1x32xf32, #tpu.memory_space<vmem>>, vector<1x32xf32>
    tpu.vector_store %arg8[%c0_16, %c0_17], %22 {strides = array<i32>} : memref<1x32xf32, #tpu.memory_space<vmem>>, vector<1x32xf32>,
    return
  }
  func.func @transform_0(%arg0: i32) -> (i32, i32) {
    %c0_i32 = arith.constant 0 : i32
    %c0_i32_0 = arith.constant 0 : i32
    return %arg0, %c0_i32 : i32, i32
  }
  func.func @transform_1(%arg0: i32) -> (i32, i32) {
    %c0_i32 = arith.constant 0 : i32
    %c0_i32_0 = arith.constant 0 : i32
    %c0_i32_1 = arith.constant 0 : i32
    return %c0_i32, %c0_i32_0 : i32, i32
  }
  func.func @transform_2(%arg0: i32) -> (i32, i32) {
    %c0_i32 = arith.constant 0 : i32
    %c0_i32_0 = arith.constant 0 : i32
    %c0_i32_1 = arith.constant 0 : i32
    return %c0_i32, %c0_i32_0 : i32, i32
  }
  func.func @transform_3(%arg0: i32) -> (i32, i32) {
    %c0_i32 = arith.constant 0 : i32
    %c0_i32_0 = arith.constant 0 : i32
    %c0_i32_1 = arith.constant 0 : i32
    return %c0_i32, %c0_i32_0 : i32, i32
  }
  func.func @transform_4(%arg0: i32) -> (i32, i32) {
    %c0_i32 = arith.constant 0 : i32
    %c0_i32_0 = arith.constant 0 : i32
    %c0_i32_1 = arith.constant 0 : i32
    return %c0_i32, %c0_i32_0 : i32, i32
  }
  func.func @transform_5(%arg0: i32) -> (i32, i32) {
    %c0_i32 = arith.constant 0 : i32
    %c0_i32_0 = arith.constant 0 : i32
    %c0_i32_1 = arith.constant 0 : i32
    return %c0_i32, %c0_i32_0 : i32, i32
  }
  func.func @transform_6(%arg0: i32) -> i32 {
    %c0_i32 = arith.constant 0 : i32
    %c0_i32_0 = arith.constant 0 : i32
    return %c0_i32 : i32
  }
  func.func @transform_7(%arg0: i32) -> (i32, i32) {
    %c0_i32 = arith.constant 0 : i32
    %c0_i32_0 = arith.constant 0 : i32
    return %c0_i32, %arg0 : i32, i32
  }
}

</mosaic_0001>

<bundles_post_ra>
// kernel: tpu_custom_call.1
= control target key start
LH: loop header
LB: loop body
LE: loop exit
PB: predicated region body
PF: predicated region fallthrough
CT: control target
= control target key end

     0   :  { %vm88_vm0 = vcmask 130048   ;;  %v567_v7 = vmov 0   ;;  %s750_s0 = inlined_call_operand.vmem [shape: f32[32,16], index: 0, kind: input, shape index: {}]   ;;  %s751_s1 = inlined_call_operand.vmem [shape: f32[64,16], index: 1, kind: input, shape index: {}]   ;;  %s752_s2 = inlined_call_operand.vmem [shape: f32[64,1], index: 2, kind: input, shape index: {}]   ;;  %s753_s3 = inlined_call_operand.vmem [shape: f32[32,64], index: 3, kind: input, shape index: {}]   ;;  %s754_s4 = inlined_call_operand.vmem [shape: f32[32,1], index: 4, kind: input, shape index: {}]   ;;  %s755_s5 = inlined_call_operand.vmem [shape: f32[32,1], index: 5, kind: input, shape index: {}]   ;;  %s756_s6 = inlined_call_operand.<no memory space> [shape: f32[1], index: 6, kind: input, shape index: {}]   ;;  %s757_s7 = inlined_call_operand.hbm [shape: f32[1,32], index: 7, kind: output, shape index: {}]  }
   0x1   :  { %v36_v0 = vld [vmem:[%s750_s0] sm:$0xff]  ;;  %v37_v1 = vld [vmem:[%s750_s0 + $0x8] sm:$0xff]  ;;  %v38_v2 = vld [vmem:[%s750_s0 + $0x10] sm:$0xff]  ;;  %541 = vset.pattern.permute.xlu0 %v567_v7  ;;  %542 = vset.pattern.permute.xlu1 %v567_v7 }
   0x2   :  { %v511_v3 = vpack.c.bf16 %v37_v1, %v36_v0  ;;  %vm620_vm1 = vmpackc.low %vm88_vm0, %vm88_vm0  ;;  %v39_v5 = vld [vmem:[%s750_s0 + $0x18] sm:$0xff]  ;;  %v28_v6 = vld [vmem:[%s751_s1] sm:$0xff] }
   0x3   :  { %v517_v8 = vpack.c.bf16 %v39_v5, %v38_v2  ;;  %477 = vmatprep.mubr.msk.f32.mxu0 %vm88_vm0, %v28_v6  ;;  %v40_v9 = vld [vmem:[%s752_s2] sm:$0xff]  ;;  %v42_v10 = vld [vmem:[%s752_s2 + $0x10] sm:$0xff]  ;;  %v41_v11 = vld [vmem:[%s752_s2 + $0x8] sm:$0xff] }
   0x4   :  { %513 = vmatprep.subr.msk.bf16.mxu0 %vm620_vm1, %v511_v3  ;;  %50 = vperm.xlu0 %541, %v40_v9   ;;  %v43_v12 = vld [vmem:[%s752_s2 + $0x18] sm:$0xff] }
   0x5   :  { %516 = vmatpush3.bf16.xpose.msk.msra.mxu0 %vm620_vm1, %v511_v3  ;;  %60 = vperm.xlu1 %542, %v42_v10  }
   0x6   :  { %519 = vmatprep.subr.msk.bf16.mxu0 %vm620_vm1, %v517_v8 }
   0x8   :  { %55 = vperm.xlu0 %541, %v41_v11  }
   0x9   :  { %13 = vsyncpa [#allocation4], 0  ;;  %65 = vperm.xlu1 %542, %v43_v12   ;;  %v44_v13 = vld [vmem:[%s752_s2 + $0x20] sm:$0xff]  ;;  %v45_v14 = vld [vmem:[%s752_s2 + $0x28] sm:$0xff]  ;;  %vm266_vm2 = vcmask 523264   ;;  %vm396_vm3 = vcmask 261120  }
   0xa   :  { %v46_v15 = vld [vmem:[%s752_s2 + $0x30] sm:$0xff]  ;;  %v47_v16 = vld [vmem:[%s752_s2 + $0x38] sm:$0xff]  ;;  %v29_v17 = vld [vmem:[%s751_s1 + $0x8] sm:$0xff]  ;;  %s568_s0 = smov [#allocation3]   ;;  %vm413_vm4 = vcmask 253952  }
   0xb   :  { %v30_v18 = vld [vmem:[%s751_s1 + $0x10] sm:$0xff]  ;;  %v242_v19 = vld [vmem:[%s754_s4] sm:$0xff]  ;;  %v243_v20 = vld [vmem:[%s754_s4 + $0x8] sm:$0xff]  ;;  %s421_s13 = sshll.u32 %s568_s0, 4  ;;  %s422_s13 = int_to_ptr.vmem [resolvable:$true] %s421_s13 }
   0xc   :  { %70 = vperm.xlu0 %541, %v44_v13   ;;  %v31_v21 = vld [vmem:[%s751_s1 + $0x18] sm:$0xff]  ;;  %v32_v22 = vld [vmem:[%s751_s1 + $0x20] sm:$0xff]  ;;  %v244_v23 = vld [vmem:[%s754_s4 + $0x10] sm:$0xff]  ;;  %s543_s14 = scalar_lea.vmem %s422_s13, 16  ;;  %s547_s15 = scalar_lea.vmem %s422_s13, 32 }
   0xd   :  { %522 = vmatpush3.bf16.xpose.msk.msra.mxu0 %vm620_vm1, %v517_v8  ;;  %75 = vperm.xlu1 %542, %v45_v14   ;;  %v245_v24 = vld [vmem:[%s754_s4 + $0x18] sm:$0xff]  ;;  %v33_v25 = vld [vmem:[%s751_s1 + $0x28] sm:$0xff]  ;;  %v34_v26 = vld [vmem:[%s751_s1 + $0x30] sm:$0xff]  ;;  %p544_p0 = scmp.ne.s32.totalorder %s422_s13, %s543_s14  ;;  %p548_p1 = scmp.lt.s32.totalorder %s422_s13, %s422_s13 }
   0xe   :  { %v368_v27 = vld [vmem:[%s755_s5] sm:$0xff]  ;;  %v369_v28 = vld [vmem:[%s755_s5 + $0x8] sm:$0xff]  ;;  %v35_v29 = vld [vmem:[%s751_s1 + $0x38] sm:$0xff]  ;;  %p549_p2 = scmp.lt.s32.totalorder %s547_s15, %s543_s14 }
   0xf   :  { %v370_v30 = vld [vmem:[%s755_s5 + $0x10] sm:$0xff]  ;;  %v371_v31 = vld [vmem:[%s755_s5 + $0x18] sm:$0xff]  ;;  %v238_v32 = vld [vmem:[%s753_s3] sm:$0xff] }
  0x10   :  { %80 = vperm.xlu0 %541, %v46_v15   ;;  %505 = vmatprep.mubr.msk.f32.mxu1 %vm266_vm2, %v238_v32  ;;  %v239_v5 = vld [vmem:[%s753_s3 + $0x8] sm:$0xff]  ;;  %v240_v6 = vld [vmem:[%s753_s3 + $0x10] sm:$0xff]  ;;  %v241_v7 = vld [vmem:[%s753_s3 + $0x18] sm:$0xff]  ;;  %p550_p3 = por %p549_p2, %p548_p1 }
  0x11   :  { %85 = vperm.xlu1 %542, %v47_v16  }
  0x12   :  { %p551_p4 = pnand %p550_p3, %p544_p0 }
  0x14   :  { %478 = vmatmul.mubr.msk.f32.vlgmr.msra.gmra.mrb[0].mxu0 %vm88_vm0, %v29_v17  ;;  %248 = vperm.xlu0 %541, %v242_v19  }
  0x15   :  { %480 = vmatprep.mubr.msk.f32.mxu0 %vm88_vm0, %v30_v18  ;;  %253 = vperm.xlu1 %542, %v243_v20  }
  0x18   :  { %481 = vmatmul.mubr.msk.f32.gmra.mrb[2].mxu0 %vm88_vm0, %v31_v21  ;;  %258 = vperm.xlu0 %541, %v244_v23  }
  0x19   :  { %483 = vmatprep.mubr.msk.f32.mxu0 %vm88_vm0, %v32_v22  ;;  %263 = vperm.xlu1 %542, %v245_v24  }
  0x1c   :  { %484 = vmatmul.mubr.msk.f32.gmra.mrb[4].mxu0 %vm88_vm0, %v33_v25  ;;  %374 = vperm.xlu0 %541, %v368_v27  }
  0x1d   :  { %486 = vmatprep.mubr.msk.f32.mxu0 %vm88_vm0, %v34_v26  ;;  %379 = vperm.xlu1 %542, %v369_v28  }
  0x20   :  { %487 = vmatmul.mubr.msk.f32.gmra.mrb[6].mxu0 %vm88_vm0, %v35_v29  ;;  %384 = vperm.xlu0 %541, %v370_v30  }
  0x21   :  { %389 = vperm.xlu1 %542, %v371_v31  }
  0x83   :  { %v51_v33 = vpop.permute.xlu0 %50 }
  0x84   :  { %v61_v34 = vpop.permute.xlu1 %60 }
  0x87   :  { %v56_v35 = vpop.permute.xlu0 %55 }
  0x88   :  { %v66_v36 = vpop.permute.xlu1 %65 }
  0x8b   :  { %v71_v49 = vpop.permute.xlu0 %70 }
  0x8c   :  { %v76_v46 = vpop.permute.xlu1 %75 }
  0x8f   :  { %v81_v61 = vpop.permute.xlu0 %80 }
  0x90   :  { %v86_v58 = vpop.permute.xlu1 %85 }
  0x93   :  { %v249_v8 = vpop.permute.xlu0 %248 }
  0x94   :  { %v254_v9 = vpop.permute.xlu1 %253 }
  0x97   :  { %v259_v10 = vpop.permute.xlu0 %258 }
  0x98   :  { %v264_v11 = vpop.permute.xlu1 %263 }
  0x9b   :  { %v375_v16 = vpop.permute.xlu0 %374 }
  0x9c   :  { %v380_v17 = vpop.permute.xlu1 %379 }
  0x9f   :  { %v385_v30 = vpop.permute.xlu0 %384 }
  0xa0   :  { %v390_v31 = vpop.permute.xlu1 %389 }
  0xe7   :  { %v479_v37 = vpop.f32.mrb[0].mxu0 }
  0xe8   :  { %v197_v38 = vadd.f32 %v479_v37, %v56_v35  ;;  %v191_v39 = vpop.f32.mrb[1].mxu0 }
  0xe9   :  { %v192_v40 = vadd.f32 %v191_v39, %v51_v33 }
  0xea   :  { %v231_v41 = vmax.f32 %v197_v38, 0.0 }
  0xeb   :  { %v230_v42 = vmax.f32 %v192_v40, 0.0  ;;  %v482_v43 = vpop.f32.mrb[2].mxu0 }
  0xec   :  { %v207_v44 = vadd.f32 %v482_v43, %v66_v36  ;;  %v201_v45 = vpop.f32.mrb[3].mxu0 }
  0xed   :  { %v202_v47 = vadd.f32 %v201_v45, %v61_v34  ;;  %v523_v48 = vpack.c.bf16 %v231_v41, %v230_v42 }
  0xee   :  { %v233_v50 = vmax.f32 %v207_v44, 0.0  ;;  %v411_v44 = vstv %s756_s6 }
  0xef   :  { %v232_v51 = vmax.f32 %v202_v47, 0.0  ;;  %v485_v52 = vpop.f32.mrb[4].mxu0  ;;  %524 = vmatprep.subr.bf16.mxu1 %v523_v48 }
  0xf0   :  { %v217_v53 = vadd.f32 %v485_v52, %v76_v46  ;;  %v211_v54 = vpop.f32.mrb[5].mxu0  ;;  %526 = vmatpush3.bf16.msra.mxu1 %v523_v48 }
  0xf1   :  { %v527_v55 = vpack.c.bf16 %v233_v50, %v232_v51  ;;  %v212_v56 = vadd.f32 %v211_v54, %v71_v49 }
  0xf2   :  { %v235_v57 = vmax.f32 %v217_v53, 0.0 }
  0xf3   :  { %v234_v59 = vmax.f32 %v212_v56, 0.0  ;;  %v488_v60 = vpop.f32.mrb[6].mxu0  ;;  %528 = vmatprep.subr.bf16.mxu1 %v527_v55 }
  0xf4   :  { %v227_v62 = vadd.f32 %v488_v60, %v86_v58  ;;  %v221_v63 = vpop.f32.mrb[7].mxu0  ;;  %530 = vmatpush3.bf16.msra.mxu1 %v527_v55 }
  0xf5   :  { %v531_v0 = vpack.c.bf16 %v235_v57, %v234_v59  ;;  %v222_v1 = vadd.f32 %v221_v63, %v81_v61 }
  0xf6   :  { %v237_v2 = vmax.f32 %v227_v62, 0.0 }
  0xf7   :  { %v236_v3 = vmax.f32 %v222_v1, 0.0  ;;  %532 = vmatprep.subr.bf16.mxu1 %v531_v0 }
  0xf8   :  { %534 = vmatpush3.bf16.msra.mxu1 %v531_v0 }
  0xf9   :  { %v535_v4 = vpack.c.bf16 %v237_v2, %v236_v3 }
  0xfb   :  { %536 = vmatprep.subr.bf16.mxu1 %v535_v4 }
  0xfc   :  { %538 = vmatpush3.bf16.msra.mxu1 %v535_v4 }
  0xff   :  { %506 = vmatmul.mubr.msk.f32.vlgmr.msra.gmra.mrb[0].mxu1 %vm266_vm2, %v239_v5 }
 0x100   :  { %508 = vmatprep.mubr.msk.f32.mxu1 %vm266_vm2, %v240_v6 }
 0x103   :  { %509 = vmatmul.mubr.msk.f32.gmra.mrb[2].mxu1 %vm266_vm2, %v241_v7 }
 0x1d2   :  { %v507_v12 = vpop.f32.mrb[0].mxu1 }
 0x1d3   :  { %v351_v13 = vadd.f32 %v507_v12, %v254_v9  ;;  %v345_v14 = vpop.f32.mrb[1].mxu1 }
 0x1d4   :  { %v346_v15 = vadd.f32 %v345_v14, %v249_v8 }
 0x1d5   :  { %v365_v18 = vmax.f32 %v351_v13, 0.0 }
 0x1d6   :  { %v364_v19 = vmax.f32 %v346_v15, 0.0  ;;  %v510_v20 = vpop.f32.mrb[2].mxu1 }
 0x1d7   :  { %v393_v21 = vmul.f32 %v380_v17, %v365_v18  ;;  %v361_v22 = vadd.f32 %v510_v20, %v264_v11  ;;  %v355_v23 = vpop.f32.mrb[3].mxu1 }
 0x1d8   :  { %v392_v24 = vmul.f32 %v375_v16, %v364_v19  ;;  %v356_v25 = vadd.f32 %v355_v23, %v259_v10 }
 0x1d9   :  { %v398_v26 = vsel %vm396_vm3, %v393_v21, 0.0  ;;  %v367_v27 = vmax.f32 %v361_v22, 0.0 }
 0x1da   :  { %v397_v28 = vsel %vm396_vm3, %v392_v24, 0.0  ;;  %v366_v29 = vmax.f32 %v356_v25, 0.0 }
 0x1db   :  { %v399_v32 = vadd.f32 %v398_v26, %v397_v28  ;;  %v395_v33 = vmul.f32 %v390_v31, %v367_v27 }
 0x1dc   :  { %v394_v34 = vmul.f32 %v385_v30, %v366_v29 }
 0x1dd   :  { %v402_v37 = vsel %vm396_vm3, %v395_v33, 0.0 }
 0x1de   :  { %v400_v35 = vsel %vm396_vm3, %v394_v34, 0.0 }
 0x1df   :  { %v401_v36 = vadd.f32 %v400_v35, %v399_v32 }
 0x1e1   :  { %v403_v38 = vadd.f32 %v402_v37, %v401_v36 }
 0x1e3   :  { %v404_v39 = vrot.slane %v403_v38, 4 }
 0x1e5   :  { %v405_v40 = vadd.f32 %v404_v39, %v403_v38 }
 0x1e7   :  { %v406_v41 = vrot.slane %v405_v40, 2 }
 0x1e9   :  { %v407_v42 = vadd.f32 %v406_v41, %v405_v40 }
 0x1eb   :  { %v408_v43 = vrot.slane %v407_v42, 1 }
 0x1ed   :  { %v409_v45 = vadd.f32 %v408_v43, %v407_v42 }
 0x1ef   :  { %v412_v46 = vadd.f32 %v411_v44, %v409_v45 }
 0x1f1   :  { %414 = vst.msk [vmem:[#allocation3] sm:$0x1] %vm413_vm4, %v412_v46 }
 0x1f2   :  { %554 = shalt.err (!%p551_p4)
}
 0x1f3   :  { %s555_s18 = scalar_lea.hbm %s757_s7, 16 }
 0x1f4   :  { %p556_p5 = scmp.ne.s32.totalorder %s757_s7, %s555_s18  ;;  %p559_p6 = scmp.lt.u32.totalorder %s555_s18, %s757_s7 }
 0x1f6   :  { %p561_p7 = pnand %p559_p6, %p556_p5 }
 0x1f8   :  { %564 = shalt.err (!%p561_p7)
}
 0x1f9   :  { %424 = dma.vmem_to_hbm [thread:$0]  %s422_s13, 16, %s757_s7, [#allocation4]  }
 0x1fa   :  { %565 = dma.done.wait [#allocation4], 16  }
 0x1fb   :  { %566 = vsyncadd [#allocation4], 4294967280 }
 0x1fc   :  { %428 = vsyncpa [#allocation4], 1 }

</bundles_post_ra>
